<compile_context>
chip_gen: v5e
topology: v5e:2x2
jax: 0.10.0
libtpu: 0.0.40
codegen_flags: <defaults>
</compile_context>

<pallas_src>
import functools

import jax
import jax.numpy as jnp
from jax.experimental import pallas as pl
from jax.experimental.pallas import tpu as pltpu


# ---------------------------------------------------------------------------
# Kernel helpers
# ---------------------------------------------------------------------------

def _make_rowmax(n_valid, n_pad):
    """Masked max over the lane (point) axis: (C, n_pad) -> (C, 1)."""
    if n_valid == n_pad:
        return lambda v: jnp.max(v, axis=1, keepdims=True)
    neg = float(jnp.finfo(jnp.float32).min)

    def rowmax(v):
        lane = jax.lax.broadcasted_iota(jnp.int32, v.shape, 1)
        return jnp.max(jnp.where(lane < n_valid, v, neg), axis=1, keepdims=True)

    return rowmax


def _lane_bcast(v, width=128):
    """(C, 1) -> (C, width) lane-broadcast (one vreg wide by default)."""
    return jnp.broadcast_to(v, (v.shape[0], width))


def _trunk(x_ref, pos_ref, wix_ref, wip_ref, bin_ref,
           w0_ref, b0_ref, w1a_ref, w1b_ref, b1_ref,
           w2a_ref, w2b_ref, b2_ref, w3a_ref, w3b_ref, b3_ref,
           rowmax, cd):
    """Shared trunk up to fc_3; returns z = fc_3(relu(...)) as (H, Npad) f32."""
    f32 = jnp.float32
    x = x_ref[0]            # (C_in, Npad) compute dtype
    pos = pos_ref[0]        # (3,   Npad) compute dtype

    # fc_in on cat([x, pos]) expressed as two dots (no channel concat needed).
    h = (jnp.dot(wix_ref[...], x, preferred_element_type=f32)
         + jnp.dot(wip_ref[...], pos, preferred_element_type=f32)
         + bin_ref[...])                                        # (2H, Npad)

    # mlp layer 0: full (H, 2H) weight on relu(fc_in output).
    y = (jnp.dot(w0_ref[...], jnp.maximum(h, 0.0).astype(cd),
                 preferred_element_type=f32) + b0_ref[...])      # (H, Npad)
    p = rowmax(y)                                                # (H, 1)

    # mlp layers 1 and 2: input is cat([y, pool(y)]).  The pooled half is a
    # single column -> do W_b @ relu(pool) on 128 lanes only and add the
    # resulting (H,1) column lane-broadcast (saves ~H*H*N flops per layer).
    for wa_ref, wb_ref, bb_ref in ((w1a_ref, w1b_ref, b1_ref),
                                   (w2a_ref, w2b_ref, b2_ref)):
        ay = jnp.maximum(y, 0.0).astype(cd)
        ap = _lane_bcast(jnp.maximum(p, 0.0)).astype(cd)         # (H, 128)
        pool_col = jnp.dot(wb_ref[...], ap,
                           preferred_element_type=f32)[:, 0:1]   # (H, 1)
        y = (jnp.dot(wa_ref[...], ay, preferred_element_type=f32)
             + pool_col + bb_ref[...])                           # (H, Npad)
        p = rowmax(y)

    # fc_3 on relu(cat([y2, pool(y2)])) with the same pooled-column trick.
    ay = jnp.maximum(y, 0.0).astype(cd)
    ap = _lane_bcast(jnp.maximum(p, 0.0)).astype(cd)
    pool_col = jnp.dot(w3b_ref[...], ap, preferred_element_type=f32)[:, 0:1]
    z = (jnp.dot(w3a_ref[...], ay, preferred_element_type=f32)
         + pool_col + b3_ref[...])                               # (H, Npad)
    return z


def _pointnet_cls_kernel(x_ref, pos_ref, wix_ref, wip_ref, bin_ref,
                         w0_ref, b0_ref, w1a_ref, w1b_ref, b1_ref,
                         w2a_ref, w2b_ref, b2_ref, w3a_ref, w3b_ref, b3_ref,
                         wout_ref, bout_ref, out_ref, *, n_valid, n_pad, cd):
    rowmax = _make_rowmax(n_valid, n_pad)
    z = _trunk(x_ref, pos_ref, wix_ref, wip_ref, bin_ref,
               w0_ref, b0_ref, w1a_ref, w1b_ref, b1_ref,
               w2a_ref, w2b_ref, b2_ref, w3a_ref, w3b_ref, b3_ref,
               rowmax, cd)
    g = rowmax(z)                                   # (H, 1) global max-pool
    # fc_out (Linear): 128-lane broadcast keeps the dot lane-dense; all
    # columns are identical so lane 0 is the answer.
    g128 = _lane_bcast(g).astype(cd)
    o = (jnp.dot(wout_ref[...], g128,
                 preferred_element_type=jnp.float32)[:, 0:1]
         + bout_ref[...])                           # (out, 1)
    # Lane-dense unmasked store; wrapper keeps lane 0.
    out_ref[0] = jnp.broadcast_to(o, out_ref.shape[1:]).astype(out_ref.dtype)


def _pointnet_seg_kernel(x_ref, pos_ref, wix_ref, wip_ref, bin_ref,
                         w0_ref, b0_ref, w1a_ref, w1b_ref, b1_ref,
                         w2a_ref, w2b_ref, b2_ref, w3a_ref, w3b_ref, b3_ref,
                         wouta_ref, woutb_ref, bout_ref, out_ref,
                         *, n_valid, n_pad, cd):
    rowmax = _make_rowmax(n_valid, n_pad)
    z = _trunk(x_ref, pos_ref, wix_ref, wip_ref, bin_ref,
               w0_ref, b0_ref, w1a_ref, w1b_ref, b1_ref,
               w2a_ref, w2b_ref, b2_ref, w3a_ref, w3b_ref, b3_ref,
               rowmax, cd)
    p = rowmax(z)                                   # (H, 1)
    p128 = _lane_bcast(p).astype(cd)
    pool_col = jnp.dot(woutb_ref[...], p128,
                       preferred_element_type=jnp.float32)[:, 0:1]   # (out, 1)
    o = (jnp.dot(wouta_ref[...], z.astype(cd),
                 preferred_element_type=jnp.float32)
         + pool_col + bout_ref[...])                # (out, Npad)
    out_ref[0] = o.astype(out_ref.dtype)


# ---------------------------------------------------------------------------
# Wrapper
# ---------------------------------------------------------------------------

def pointnet_forward(x, pos, params, *, segmentation=False,
                     compute_dtype=jnp.float32):
    """PointNet forward.  x: (B, C_in, N), pos: (B, 3, N) in PyTorch NCL layout.

    Returns (B, out_channels) if not segmentation, else (B, out_channels, N).
    """
    B, C_in, N = x.shape
    assert pos.shape == (B, 3, N)
    two_h, cin3 = params["w_in"].shape
    assert cin3 == C_in + 3
    H = two_h // 2
    out_ch = params["w_out"].shape[0]
    cd = jnp.dtype(compute_dtype)
    f32 = jnp.float32

    # Lane-dense layout: points on the lane axis; pad N to a multiple of 128
    # so all per-point stores/loads are unmasked.  Padded lanes are masked out
    # of every max-pool inside the kernel.
    n_pad = int(pl.cdiv(N, 128) * 128)
    if n_pad != N:
        pad = ((0, 0), (0, 0), (0, n_pad - N))
        x = jnp.pad(x, pad)
        pos = jnp.pad(pos, pad)
    x = x.astype(cd)
    pos = pos.astype(cd)

    def colsplit(w):
        return w[:, :H], w[:, H:]

    def bias(b):
        return b.reshape(-1, 1).astype(f32)

    w_in = params["w_in"].astype(cd)
    wix, wip = w_in[:, :C_in], w_in[:, C_in:]
    w0 = params["w_mlp"][0].astype(cd)
    w1a, w1b = colsplit(params["w_mlp"][1].astype(cd))
    w2a, w2b = colsplit(params["w_mlp"][2].astype(cd))
    w3a, w3b = colsplit(params["w_fc3"].astype(cd))

    args = [x, pos, wix, wip, bias(params["b_in"]),
            w0, bias(params["b_mlp"][0]),
            w1a, w1b, bias(params["b_mlp"][1]),
            w2a, w2b, bias(params["b_mlp"][2]),
            w3a, w3b, bias(params["b_fc3"])]

    if segmentation:
        wouta, woutb = colsplit(params["w_out"].astype(cd))
        args += [wouta, woutb, bias(params["b_out"])]
        kernel = functools.partial(_pointnet_seg_kernel,
                                   n_valid=N, n_pad=n_pad, cd=cd)
        out_shape = jax.ShapeDtypeStruct((B, out_ch, n_pad), f32)
        out_spec = pl.BlockSpec((1, out_ch, n_pad), lambda b: (b, 0, 0))
        out_lanes = n_pad
    else:
        args += [params["w_out"].astype(cd), bias(params["b_out"])]
        kernel = functools.partial(_pointnet_cls_kernel,
                                   n_valid=N, n_pad=n_pad, cd=cd)
        out_shape = jax.ShapeDtypeStruct((B, out_ch, 128), f32)
        out_spec = pl.BlockSpec((1, out_ch, 128), lambda b: (b, 0, 0))
        out_lanes = 128

    def const_spec(a):  # full block, same for every grid step (weights/biases)
        return pl.BlockSpec(a.shape, lambda b: (0,) * a.ndim)

    in_specs = ([pl.BlockSpec((1, C_in, n_pad), lambda b: (b, 0, 0)),
                 pl.BlockSpec((1, 3, n_pad), lambda b: (b, 0, 0))]
                + [const_spec(a) for a in args[2:]])

    # Advisory cost estimate for the XLA scheduler (MXU flops dominate).
    trunk_flops = 2 * B * n_pad * (two_h * (C_in + 3) + H * two_h + 3 * H * H)
    pool_flops = 2 * B * 128 * H * (3 * H + (out_ch if segmentation else 0))
    head_flops = 2 * B * (n_pad if segmentation else 128) * out_ch * H
    out_elems = B * out_ch * out_lanes
    bytes_accessed = int(sum(a.size * a.dtype.itemsize for a in args)
                         + out_elems * 4)
    cost = pl.CostEstimate(flops=int(trunk_flops + pool_flops + head_flops),
                           transcendentals=0,
                           bytes_accessed=bytes_accessed)

    # Raise the scoped VMEM limit only if this kernel actually needs it
    # (v5e default is 16 MiB); stay below v7x's 64 MiB/TC physical VMEM.
    block_bytes = 2 * (x.dtype.itemsize * (C_in + 3) * n_pad
                       + 4 * out_ch * out_lanes)
    weight_bytes = 2 * sum(a.size * a.dtype.itemsize for a in args[2:])
    interm_bytes = 6 * two_h * n_pad * 4
    vmem_needed = block_bytes + weight_bytes + interm_bytes
    vmem_limit = None
    if vmem_needed > 16 * 2**20:
        vmem_limit = int(min(vmem_needed * 5 // 4, 56 * 2**20))

    out = pl.pallas_call(
        kernel,
        out_shape=out_shape,
        grid=(B,),
        in_specs=in_specs,
        out_specs=out_spec,
        compiler_params=pltpu.CompilerParams(
            dimension_semantics=("parallel",),
            vmem_limit_bytes=vmem_limit),
        cost_estimate=cost,
    )(*args)

    if segmentation:
        return out[:, :, :N]
    return out[:, :, 0]


# ---------------------------------------------------------------------------
# Parameters & pure-JAX reference
# ---------------------------------------------------------------------------

def init_params(key, in_channels, out_channels, hidden_dim=32,
                segmentation=False):
    """Deterministic synthetic parameters with the module's shapes.

    Conv1d(kernel_size=1) weights stored as (out, in); Linear as (out, in).
    """
    h = hidden_dim
    keys = iter(jax.random.split(key, 16))

    def w(shape):
        return jax.random.normal(next(keys), shape, jnp.float32) * 0.1

    params = {
        "w_in": w((2 * h, in_channels + 3)),
        "b_in": w((2 * h,)),
        "w_mlp": [w((h, 2 * h)) for _ in range(3)],
        "b_mlp": [w((h,)) for _ in range(3)],
        "w_fc3": w((h, 2 * h)),
        "b_fc3": w((h,)),
        "w_out": w((out_channels, 2 * h)) if segmentation
                 else w((out_channels, h)),
    }
    params["b_out"] = w((out_channels,))
    return params


def _reference(x, pos, params, *, segmentation=False):
    """Pure-JAX mirror of the PyTorch forward (fp32, highest precision)."""
    hp = jax.lax.Precision.HIGHEST

    def conv1x1(w, b, v):
        return jnp.einsum("oc,bcn->bon", w, v, precision=hp) + b[None, :, None]

    relu = jax.nn.relu
    h = conv1x1(params["w_in"], params["b_in"],
                jnp.concatenate([x, pos], axis=1))
    for wl, bl in zip(params["w_mlp"], params["b_mlp"]):
        y = conv1x1(wl, bl, relu(h))
        pool = jnp.broadcast_to(jnp.max(y, axis=2, keepdims=True), y.shape)
        h = jnp.concatenate([y, pool], axis=1)
    z = conv1x1(params["w_fc3"], params["b_fc3"], relu(h))
    if segmentation:
        pool = jnp.broadcast_to(jnp.max(z, axis=2, keepdims=True), z.shape)
        return conv1x1(params["w_out"], params["b_out"],
                       jnp.concatenate([z, pool], axis=1))
    g = jnp.max(z, axis=2)                                    # (B, H)
    return (jnp.einsum("bh,oh->bo", g, params["w_out"], precision=hp)
            + params["b_out"][None, :])


# ---------------------------------------------------------------------------
# Demo / self-test
# ---------------------------------------------------------------------------

if __name__ == "__main__":
    B, C_IN, N, HIDDEN, OUT = 2, 4, 16, 32, 8

    key = jax.random.PRNGKey(0)
    kx, kpos, kp_cls, kp_seg = jax.random.split(key, 4)
    x = jax.random.normal(kx, (B, C_IN, N), jnp.float32)
    pos = jax.random.normal(kpos, (B, 3, N), jnp.float32)

    # Classification head (module default), fp32.
    p_cls = init_params(kp_cls, C_IN, OUT, HIDDEN, segmentation=False)
    out_cls = jax.block_until_ready(pointnet_forward(x, pos, p_cls))
    ref_cls = _reference(x, pos, p_cls)
    assert out_cls.shape == (B, OUT)
    assert jnp.allclose(out_cls, ref_cls, atol=1e-4, rtol=1e-4)

    # Segmentation head, fp32.
    p_seg = init_params(kp_seg, C_IN, OUT, HIDDEN, segmentation=True)
    out_seg = jax.block_until_ready(
        pointnet_forward(x, pos, p_seg, segmentation=True))
    ref_seg = _reference(x, pos, p_seg, segmentation=True)
    assert out_seg.shape == (B, OUT, N)
    assert jnp.allclose(out_seg, ref_seg, atol=1e-4, rtol=1e-4)

    # bf16 compute path (f32 accumulation): halves HBM traffic on v6e/v7x.
    out_bf16 = jax.block_until_ready(
        pointnet_forward(x, pos, p_cls, compute_dtype=jnp.bfloat16))
    assert jnp.allclose(out_bf16, ref_cls, atol=1e-1, rtol=1e-1)

    print("KERNEL_OK")
</pallas_src>

<mosaic_0001>
module attributes {stable_mosaic.version = 11 : i64} {
  func.func @_pointnet_cls_kernel(%arg0: i32, %arg1: memref<1x4x128xf32, #tpu.memory_space<vmem>>, %arg2: memref<1x3x128xf32, #tpu.memory_space<vmem>>, %arg3: memref<64x4xf32, #tpu.memory_space<vmem>>, %arg4: memref<64x3xf32, #tpu.memory_space<vmem>>, %arg5: memref<64x1xf32, #tpu.memory_space<vmem>>, %arg6: memref<32x64xf32, #tpu.memory_space<vmem>>, %arg7: memref<32x1xf32, #tpu.memory_space<vmem>>, %arg8: memref<32x32xf32, #tpu.memory_space<vmem>>, %arg9: memref<32x32xf32, #tpu.memory_space<vmem>>, %arg10: memref<32x1xf32, #tpu.memory_space<vmem>>, %arg11: memref<32x32xf32, #tpu.memory_space<vmem>>, %arg12: memref<32x32xf32, #tpu.memory_space<vmem>>, %arg13: memref<32x1xf32, #tpu.memory_space<vmem>>, %arg14: memref<32x32xf32, #tpu.memory_space<vmem>>, %arg15: memref<32x32xf32, #tpu.memory_space<vmem>>, %arg16: memref<32x1xf32, #tpu.memory_space<vmem>>, %arg17: memref<8x32xf32, #tpu.memory_space<vmem>>, %arg18: memref<8x1xf32, #tpu.memory_space<vmem>>, %arg19: memref<1x8x128xf32, #tpu.memory_space<vmem>>) attributes {dimension_semantics = [#tpu.dimension_semantics<parallel>], iteration_bounds = array<i64: 2>, scalar_prefetch = 0 : i64, scratch_operands = 0 : i64, tpu.core_type = #tpu.core_type<tc>, window_params = [{transform_indices = @transform_0, window_bounds = array<i64: 1, 4, 128>}, {transform_indices = @transform_1, window_bounds = array<i64: 1, 3, 128>}, {pipeline_mode = #tpu.pipeline_mode<synchronous>, transform_indices = @transform_2, window_bounds = array<i64: 64, 4>}, {pipeline_mode = #tpu.pipeline_mode<synchronous>, transform_indices = @transform_3, window_bounds = array<i64: 64, 3>}, {pipeline_mode = #tpu.pipeline_mode<synchronous>, transform_indices = @transform_4, window_bounds = array<i64: 64, 1>}, {pipeline_mode = #tpu.pipeline_mode<synchronous>, transform_indices = @transform_5, window_bounds = array<i64: 32, 64>}, {pipeline_mode = #tpu.pipeline_mode<synchronous>, transform_indices = @transform_6, window_bounds = array<i64: 32, 1>}, {pipeline_mode = #tpu.pipeline_mode<synchronous>, transform_indices = @transform_7, window_bounds = array<i64: 32, 32>}, {pipeline_mode = #tpu.pipeline_mode<synchronous>, transform_indices = @transform_8, window_bounds = array<i64: 32, 32>}, {pipeline_mode = #tpu.pipeline_mode<synchronous>, transform_indices = @transform_9, window_bounds = array<i64: 32, 1>}, {pipeline_mode = #tpu.pipeline_mode<synchronous>, transform_indices = @transform_10, window_bounds = array<i64: 32, 32>}, {pipeline_mode = #tpu.pipeline_mode<synchronous>, transform_indices = @transform_11, window_bounds = array<i64: 32, 32>}, {pipeline_mode = #tpu.pipeline_mode<synchronous>, transform_indices = @transform_12, window_bounds = array<i64: 32, 1>}, {pipeline_mode = #tpu.pipeline_mode<synchronous>, transform_indices = @transform_13, window_bounds = array<i64: 32, 32>}, {pipeline_mode = #tpu.pipeline_mode<synchronous>, transform_indices = @transform_14, window_bounds = array<i64: 32, 32>}, {pipeline_mode = #tpu.pipeline_mode<synchronous>, transform_indices = @transform_15, window_bounds = array<i64: 32, 1>}, {pipeline_mode = #tpu.pipeline_mode<synchronous>, transform_indices = @transform_16, window_bounds = array<i64: 8, 32>}, {pipeline_mode = #tpu.pipeline_mode<synchronous>, transform_indices = @transform_17, window_bounds = array<i64: 8, 1>}, {transform_indices = @transform_18, window_bounds = array<i64: 1, 8, 128>}]} {
    %c0 = arith.constant 0 : index
    %c0_0 = arith.constant 0 : index
    %c0_1 = arith.constant 0 : index
    %0 = vector.load %arg1[%c0, %c0_0, %c0_1] : memref<1x4x128xf32, #tpu.memory_space<vmem>>, vector<1x4x128xf32>
    %1 = vector.shape_cast %0 : vector<1x4x128xf32> to vector<4x128xf32>
    %c0_2 = arith.constant 0 : index
    %c0_3 = arith.constant 0 : index
    %c0_4 = arith.constant 0 : index
    %2 = vector.load %arg2[%c0_2, %c0_3, %c0_4] : memref<1x3x128xf32, #tpu.memory_space<vmem>>, vector<1x3x128xf32>
    %3 = vector.shape_cast %2 : vector<1x3x128xf32> to vector<3x128xf32>
    %c0_5 = arith.constant 0 : index
    %c0_6 = arith.constant 0 : index
    %4 = vector.load %arg3[%c0_5, %c0_6] : memref<64x4xf32, #tpu.memory_space<vmem>>, vector<64x4xf32>
    %cst = arith.constant dense<0.000000e+00> : vector<64x128xf32>
    %5 = tpu.matmul %4, %1, %cst {dimension_numbers = #tpu.dot_dimension_numbers<[1], [0], [0], [1], [0, 0, 1, 1], [], []>} : vector<64x4xf32>, vector<4x128xf32>, vector<64x128xf32> -> vector<64x128xf32>
    %c0_7 = arith.constant 0 : index
    %c0_8 = arith.constant 0 : index
    %6 = vector.load %arg4[%c0_7, %c0_8] : memref<64x3xf32, #tpu.memory_space<vmem>>, vector<64x3xf32>
    %cst_9 = arith.constant dense<0.000000e+00> : vector<64x128xf32>
    %7 = tpu.matmul %6, %3, %cst_9 {dimension_numbers = #tpu.dot_dimension_numbers<[1], [0], [0], [1], [0, 0, 1, 1], [], []>} : vector<64x3xf32>, vector<3x128xf32>, vector<64x128xf32> -> vector<64x128xf32>
    %8 = arith.addf %5, %7 : vector<64x128xf32>
    %c0_10 = arith.constant 0 : index
    %c0_11 = arith.constant 0 : index
    %9 = vector.load %arg5[%c0_10, %c0_11] : memref<64x1xf32, #tpu.memory_space<vmem>>, vector<64x1xf32>
    %10 = vector.broadcast %9 : vector<64x1xf32> to vector<64x128xf32>
    %11 = arith.addf %8, %10 : vector<64x128xf32>
    %c0_12 = arith.constant 0 : index
    %c0_13 = arith.constant 0 : index
    %12 = vector.load %arg6[%c0_12, %c0_13] : memref<32x64xf32, #tpu.memory_space<vmem>>, vector<32x64xf32>
    %cst_14 = arith.constant 0.000000e+00 : f32
    %13 = vector.broadcast %cst_14 : f32 to vector<64x128xf32>
    %14 = arith.maximumf %11, %13 : vector<64x128xf32>
    %cst_15 = arith.constant dense<0.000000e+00> : vector<32x128xf32>
    %15 = tpu.matmul %12, %14, %cst_15 {dimension_numbers = #tpu.dot_dimension_numbers<[1], [0], [0], [1], [0, 0, 1, 1], [], []>} : vector<32x64xf32>, vector<64x128xf32>, vector<32x128xf32> -> vector<32x128xf32>
    %c0_16 = arith.constant 0 : index
    %c0_17 = arith.constant 0 : index
    %16 = vector.load %arg7[%c0_16, %c0_17] : memref<32x1xf32, #tpu.memory_space<vmem>>, vector<32x1xf32>
    %17 = vector.broadcast %16 : vector<32x1xf32> to vector<32x128xf32>
    %18 = arith.addf %15, %17 : vector<32x128xf32>
    %19 = tpu.iota {dimensions = array<i32: 1>} : vector<32x128xi32>
    %c16_i32 = arith.constant 16 : i32
    %20 = vector.broadcast %c16_i32 : i32 to vector<32x128xi32>
    %21 = arith.cmpi slt, %19, %20 : vector<32x128xi32>
    %cst_18 = arith.constant -3.40282347E+38 : f32
    %22 = vector.broadcast %cst_18 : f32 to vector<32x128xf32>
    %23 = arith.select %21, %18, %22 : vector<32x128xi1>, vector<32x128xf32>
    %cst_19 = arith.constant dense<0xFF800000> : vector<32xf32>
    %24 = vector.multi_reduction <maximumf>, %23, %cst_19 [1] : vector<32x128xf32> to vector<32xf32>
    %25 = vector.shape_cast %24 : vector<32xf32> to vector<32x1xf32>
    %cst_20 = arith.constant 0.000000e+00 : f32
    %26 = vector.broadcast %cst_20 : f32 to vector<32x128xf32>
    %27 = arith.maximumf %18, %26 : vector<32x128xf32>
    %cst_21 = arith.constant 0.000000e+00 : f32
    %28 = vector.broadcast %cst_21 : f32 to vector<32x1xf32>
    %29 = arith.maximumf %25, %28 : vector<32x1xf32>
    %30 = vector.shape_cast %29 : vector<32x1xf32> to vector<32x1xf32>
    %31 = vector.broadcast %30 : vector<32x1xf32> to vector<32x128xf32>
    %c0_22 = arith.constant 0 : index
    %c0_23 = arith.constant 0 : index
    %32 = vector.load %arg9[%c0_22, %c0_23] : memref<32x32xf32, #tpu.memory_space<vmem>>, vector<32x32xf32>
    %cst_24 = arith.constant dense<0.000000e+00> : vector<32x128xf32>
    %33 = tpu.matmul %32, %31, %cst_24 {dimension_numbers = #tpu.dot_dimension_numbers<[1], [0], [0], [1], [0, 0, 1, 1], [], []>} : vector<32x32xf32>, vector<32x128xf32>, vector<32x128xf32> -> vector<32x128xf32>
    %34 = vector.extract_strided_slice %33 {offsets = [0, 0], sizes = [32, 1], strides = [1, 1]} : vector<32x128xf32> to vector<32x1xf32>
    %c0_25 = arith.constant 0 : index
    %c0_26 = arith.constant 0 : index
    %35 = vector.load %arg8[%c0_25, %c0_26] : memref<32x32xf32, #tpu.memory_space<vmem>>, vector<32x32xf32>
    %cst_27 = arith.constant dense<0.000000e+00> : vector<32x128xf32>
    %36 = tpu.matmul %35, %27, %cst_27 {dimension_numbers = #tpu.dot_dimension_numbers<[1], [0], [0], [1], [0, 0, 1, 1], [], []>} : vector<32x32xf32>, vector<32x128xf32>, vector<32x128xf32> -> vector<32x128xf32>
    %37 = vector.broadcast %34 : vector<32x1xf32> to vector<32x128xf32>
    %38 = arith.addf %36, %37 : vector<32x128xf32>
    %c0_28 = arith.constant 0 : index
    %c0_29 = arith.constant 0 : index
    %39 = vector.load %arg10[%c0_28, %c0_29] : memref<32x1xf32, #tpu.memory_space<vmem>>, vector<32x1xf32>
    %40 = vector.broadcast %39 : vector<32x1xf32> to vector<32x128xf32>
    %41 = arith.addf %38, %40 : vector<32x128xf32>
    %42 = tpu.iota {dimensions = array<i32: 1>} : vector<32x128xi32>
    %c16_i32_30 = arith.constant 16 : i32
    %43 = vector.broadcast %c16_i32_30 : i32 to vector<32x128xi32>
    %44 = arith.cmpi slt, %42, %43 : vector<32x128xi32>
    %cst_31 = arith.constant -3.40282347E+38 : f32
    %45 = vector.broadcast %cst_31 : f32 to vector<32x128xf32>
    %46 = arith.select %44, %41, %45 : vector<32x128xi1>, vector<32x128xf32>
    %cst_32 = arith.constant dense<0xFF800000> : vector<32xf32>
    %47 = vector.multi_reduction <maximumf>, %46, %cst_32 [1] : vector<32x128xf32> to vector<32xf32>
    %48 = vector.shape_cast %47 : vector<32xf32> to vector<32x1xf32>
    %cst_33 = arith.constant 0.000000e+00 : f32
    %49 = vector.broadcast %cst_33 : f32 to vector<32x128xf32>
    %50 = arith.maximumf %41, %49 : vector<32x128xf32>
    %cst_34 = arith.constant 0.000000e+00 : f32
    %51 = vector.broadcast %cst_34 : f32 to vector<32x1xf32>
    %52 = arith.maximumf %48, %51 : vector<32x1xf32>
    %53 = vector.shape_cast %52 : vector<32x1xf32> to vector<32x1xf32>
    %54 = vector.broadcast %53 : vector<32x1xf32> to vector<32x128xf32>
    %c0_35 = arith.constant 0 : index
    %c0_36 = arith.constant 0 : index
    %55 = vector.load %arg12[%c0_35, %c0_36] : memref<32x32xf32, #tpu.memory_space<vmem>>, vector<32x32xf32>
    %cst_37 = arith.constant dense<0.000000e+00> : vector<32x128xf32>
    %56 = tpu.matmul %55, %54, %cst_37 {dimension_numbers = #tpu.dot_dimension_numbers<[1], [0], [0], [1], [0, 0, 1, 1], [], []>} : vector<32x32xf32>, vector<32x128xf32>, vector<32x128xf32> -> vector<32x128xf32>
    %57 = vector.extract_strided_slice %56 {offsets = [0, 0], sizes = [32, 1], strides = [1, 1]} : vector<32x128xf32> to vector<32x1xf32>
    %c0_38 = arith.constant 0 : index
    %c0_39 = arith.constant 0 : index
    %58 = vector.load %arg11[%c0_38, %c0_39] : memref<32x32xf32, #tpu.memory_space<vmem>>, vector<32x32xf32>
    %cst_40 = arith.constant dense<0.000000e+00> : vector<32x128xf32>
    %59 = tpu.matmul %58, %50, %cst_40 {dimension_numbers = #tpu.dot_dimension_numbers<[1], [0], [0], [1], [0, 0, 1, 1], [], []>} : vector<32x32xf32>, vector<32x128xf32>, vector<32x128xf32> -> vector<32x128xf32>
    %60 = vector.broadcast %57 : vector<32x1xf32> to vector<32x128xf32>
    %61 = arith.addf %59, %60 : vector<32x128xf32>
    %c0_41 = arith.constant 0 : index
    %c0_42 = arith.constant 0 : index
    %62 = vector.load %arg13[%c0_41, %c0_42] : memref<32x1xf32, #tpu.memory_space<vmem>>, vector<32x1xf32>
    %63 = vector.broadcast %62 : vector<32x1xf32> to vector<32x128xf32>
    %64 = arith.addf %61, %63 : vector<32x128xf32>
    %65 = tpu.iota {dimensions = array<i32: 1>} : vector<32x128xi32>
    %c16_i32_43 = arith.constant 16 : i32
    %66 = vector.broadcast %c16_i32_43 : i32 to vector<32x128xi32>
    %67 = arith.cmpi slt, %65, %66 : vector<32x128xi32>
    %cst_44 = arith.constant -3.40282347E+38 : f32
    %68 = vector.broadcast %cst_44 : f32 to vector<32x128xf32>
    %69 = arith.select %67, %64, %68 : vector<32x128xi1>, vector<32x128xf32>
    %cst_45 = arith.constant dense<0xFF800000> : vector<32xf32>
    %70 = vector.multi_reduction <maximumf>, %69, %cst_45 [1] : vector<32x128xf32> to vector<32xf32>
    %71 = vector.shape_cast %70 : vector<32xf32> to vector<32x1xf32>
    %cst_46 = arith.constant 0.000000e+00 : f32
    %72 = vector.broadcast %cst_46 : f32 to vector<32x128xf32>
    %73 = arith.maximumf %64, %72 : vector<32x128xf32>
    %cst_47 = arith.constant 0.000000e+00 : f32
    %74 = vector.broadcast %cst_47 : f32 to vector<32x1xf32>
    %75 = arith.maximumf %71, %74 : vector<32x1xf32>
    %76 = vector.shape_cast %75 : vector<32x1xf32> to vector<32x1xf32>
    %77 = vector.broadcast %76 : vector<32x1xf32> to vector<32x128xf32>
    %c0_48 = arith.constant 0 : index
    %c0_49 = arith.constant 0 : index
    %78 = vector.load %arg15[%c0_48, %c0_49] : memref<32x32xf32, #tpu.memory_space<vmem>>, vector<32x32xf32>
    %cst_50 = arith.constant dense<0.000000e+00> : vector<32x128xf32>
    %79 = tpu.matmul %78, %77, %cst_50 {dimension_numbers = #tpu.dot_dimension_numbers<[1], [0], [0], [1], [0, 0, 1, 1], [], []>} : vector<32x32xf32>, vector<32x128xf32>, vector<32x128xf32> -> vector<32x128xf32>
    %80 = vector.extract_strided_slice %79 {offsets = [0, 0], sizes = [32, 1], strides = [1, 1]} : vector<32x128xf32> to vector<32x1xf32>
    %c0_51 = arith.constant 0 : index
    %c0_52 = arith.constant 0 : index
    %81 = vector.load %arg14[%c0_51, %c0_52] : memref<32x32xf32, #tpu.memory_space<vmem>>, vector<32x32xf32>
    %cst_53 = arith.constant dense<0.000000e+00> : vector<32x128xf32>
    %82 = tpu.matmul %81, %73, %cst_53 {dimension_numbers = #tpu.dot_dimension_numbers<[1], [0], [0], [1], [0, 0, 1, 1], [], []>} : vector<32x32xf32>, vector<32x128xf32>, vector<32x128xf32> -> vector<32x128xf32>
    %83 = vector.broadcast %80 : vector<32x1xf32> to vector<32x128xf32>
    %84 = arith.addf %82, %83 : vector<32x128xf32>
    %c0_54 = arith.constant 0 : index
    %c0_55 = arith.constant 0 : index
    %85 = vector.load %arg16[%c0_54, %c0_55] : memref<32x1xf32, #tpu.memory_space<vmem>>, vector<32x1xf32>
    %86 = vector.broadcast %85 : vector<32x1xf32> to vector<32x128xf32>
    %87 = arith.addf %84, %86 : vector<32x128xf32>
    %88 = tpu.iota {dimensions = array<i32: 1>} : vector<32x128xi32>
    %c16_i32_56 = arith.constant 16 : i32
    %89 = vector.broadcast %c16_i32_56 : i32 to vector<32x128xi32>
    %90 = arith.cmpi slt, %88, %89 : vector<32x128xi32>
    %cst_57 = arith.constant -3.40282347E+38 : f32
    %91 = vector.broadcast %cst_57 : f32 to vector<32x128xf32>
    %92 = arith.select %90, %87, %91 : vector<32x128xi1>, vector<32x128xf32>
    %cst_58 = arith.constant dense<0xFF800000> : vector<32xf32>
    %93 = vector.multi_reduction <maximumf>, %92, %cst_58 [1] : vector<32x128xf32> to vector<32xf32>
    %94 = vector.shape_cast %93 : vector<32xf32> to vector<32x1xf32>
    %95 = vector.shape_cast %94 : vector<32x1xf32> to vector<32x1xf32>
    %96 = vector.broadcast %95 : vector<32x1xf32> to vector<32x128xf32>
    %c0_59 = arith.constant 0 : index
    %c0_60 = arith.constant 0 : index
    %97 = vector.load %arg17[%c0_59, %c0_60] : memref<8x32xf32, #tpu.memory_space<vmem>>, vector<8x32xf32>
    %cst_61 = arith.constant dense<0.000000e+00> : vector<8x128xf32>
    %98 = tpu.matmul %97, %96, %cst_61 {dimension_numbers = #tpu.dot_dimension_numbers<[1], [0], [0], [1], [0, 0, 1, 1], [], []>} : vector<8x32xf32>, vector<32x128xf32>, vector<8x128xf32> -> vector<8x128xf32>
    %99 = vector.extract_strided_slice %98 {offsets = [0, 0], sizes = [8, 1], strides = [1, 1]} : vector<8x128xf32> to vector<8x1xf32>
    %c0_62 = arith.constant 0 : index
    %c0_63 = arith.constant 0 : index
    %100 = vector.load %arg18[%c0_62, %c0_63] : memref<8x1xf32, #tpu.memory_space<vmem>>, vector<8x1xf32>
    %101 = arith.addf %99, %100 : vector<8x1xf32>
    %102 = vector.shape_cast %101 : vector<8x1xf32> to vector<8x1xf32>
    %103 = vector.broadcast %102 : vector<8x1xf32> to vector<8x128xf32>
    %c0_64 = arith.constant 0 : index
    %c0_65 = arith.constant 0 : index
    %c0_66 = arith.constant 0 : index
    %104 = vector.load %arg19[%c0_64, %c0_65, %c0_66] : memref<1x8x128xf32, #tpu.memory_space<vmem>>, vector<1x8x128xf32>
    %105 = vector.shape_cast %104 : vector<1x8x128xf32> to vector<8x128xf32>
    %106 = vector.shape_cast %103 : vector<8x128xf32> to vector<1x8x128xf32>
    tpu.vector_store %arg19[%c0_64, %c0_65, %c0_66], %106 {strides = array<i32>} : memref<1x8x128xf32, #tpu.memory_space<vmem>>, vector<1x8x128xf32>,
    return
  }
  func.func @transform_0(%arg0: i32) -> (i32, i32, i32) {
    %c0_i32 = arith.constant 0 : i32
    %c0_i32_0 = arith.constant 0 : i32
    %c0_i32_1 = arith.constant 0 : i32
    return %arg0, %c0_i32, %c0_i32_0 : i32, i32, i32
  }
  func.func @transform_1(%arg0: i32) -> (i32, i32, i32) {
    %c0_i32 = arith.constant 0 : i32
    %c0_i32_0 = arith.constant 0 : i32
    %c0_i32_1 = arith.constant 0 : i32
    return %arg0, %c0_i32, %c0_i32_0 : i32, i32, i32
  }
  func.func @transform_2(%arg0: i32) -> (i32, i32) {
    %c0_i32 = arith.constant 0 : i32
    %c0_i32_0 = arith.constant 0 : i32
    %c0_i32_1 = arith.constant 0 : i32
    return %c0_i32, %c0_i32_0 : i32, i32
  }
  func.func @transform_3(%arg0: i32) -> (i32, i32) {
    %c0_i32 = arith.constant 0 : i32
    %c0_i32_0 = arith.constant 0 : i32
    %c0_i32_1 = arith.constant 0 : i32
    return %c0_i32, %c0_i32_0 : i32, i32
  }
  func.func @transform_4(%arg0: i32) -> (i32, i32) {
    %c0_i32 = arith.constant 0 : i32
    %c0_i32_0 = arith.constant 0 : i32
    %c0_i32_1 = arith.constant 0 : i32
    return %c0_i32, %c0_i32_0 : i32, i32
  }
  func.func @transform_5(%arg0: i32) -> (i32, i32) {
    %c0_i32 = arith.constant 0 : i32
    %c0_i32_0 = arith.constant 0 : i32
    %c0_i32_1 = arith.constant 0 : i32
    return %c0_i32, %c0_i32_0 : i32, i32
  }
  func.func @transform_6(%arg0: i32) -> (i32, i32) {
    %c0_i32 = arith.constant 0 : i32
    %c0_i32_0 = arith.constant 0 : i32
    %c0_i32_1 = arith.constant 0 : i32
    return %c0_i32, %c0_i32_0 : i32, i32
  }
  func.func @transform_7(%arg0: i32) -> (i32, i32) {
    %c0_i32 = arith.constant 0 : i32
    %c0_i32_0 = arith.constant 0 : i32
    %c0_i32_1 = arith.constant 0 : i32
    return %c0_i32, %c0_i32_0 : i32, i32
  }
  func.func @transform_8(%arg0: i32) -> (i32, i32) {
    %c0_i32 = arith.constant 0 : i32
    %c0_i32_0 = arith.constant 0 : i32
    %c0_i32_1 = arith.constant 0 : i32
    return %c0_i32, %c0_i32_0 : i32, i32
  }
  func.func @transform_9(%arg0: i32) -> (i32, i32) {
    %c0_i32 = arith.constant 0 : i32
    %c0_i32_0 = arith.constant 0 : i32
    %c0_i32_1 = arith.constant 0 : i32
    return %c0_i32, %c0_i32_0 : i32, i32
  }
  func.func @transform_10(%arg0: i32) -> (i32, i32) {
    %c0_i32 = arith.constant 0 : i32
    %c0_i32_0 = arith.constant 0 : i32
    %c0_i32_1 = arith.constant 0 : i32
    return %c0_i32, %c0_i32_0 : i32, i32
  }
  func.func @transform_11(%arg0: i32) -> (i32, i32) {
    %c0_i32 = arith.constant 0 : i32
    %c0_i32_0 = arith.constant 0 : i32
    %c0_i32_1 = arith.constant 0 : i32
    return %c0_i32, %c0_i32_0 : i32, i32
  }
  func.func @transform_12(%arg0: i32) -> (i32, i32) {
    %c0_i32 = arith.constant 0 : i32
    %c0_i32_0 = arith.constant 0 : i32
    %c0_i32_1 = arith.constant 0 : i32
    return %c0_i32, %c0_i32_0 : i32, i32
  }
  func.func @transform_13(%arg0: i32) -> (i32, i32) {
    %c0_i32 = arith.constant 0 : i32
    %c0_i32_0 = arith.constant 0 : i32
    %c0_i32_1 = arith.constant 0 : i32
    return %c0_i32, %c0_i32_0 : i32, i32
  }
  func.func @transform_14(%arg0: i32) -> (i32, i32) {
    %c0_i32 = arith.constant 0 : i32
    %c0_i32_0 = arith.constant 0 : i32
    %c0_i32_1 = arith.constant 0 : i32
    return %c0_i32, %c0_i32_0 : i32, i32
  }
  func.func @transform_15(%arg0: i32) -> (i32, i32) {
    %c0_i32 = arith.constant 0 : i32
    %c0_i32_0 = arith.constant 0 : i32
    %c0_i32_1 = arith.constant 0 : i32
    return %c0_i32, %c0_i32_0 : i32, i32
  }
  func.func @transform_16(%arg0: i32) -> (i32, i32) {
    %c0_i32 = arith.constant 0 : i32
    %c0_i32_0 = arith.constant 0 : i32
    %c0_i32_1 = arith.constant 0 : i32
    return %c0_i32, %c0_i32_0 : i32, i32
  }
  func.func @transform_17(%arg0: i32) -> (i32, i32) {
    %c0_i32 = arith.constant 0 : i32
    %c0_i32_0 = arith.constant 0 : i32
    %c0_i32_1 = arith.constant 0 : i32
    return %c0_i32, %c0_i32_0 : i32, i32
  }
  func.func @transform_18(%arg0: i32) -> (i32, i32, i32) {
    %c0_i32 = arith.constant 0 : i32
    %c0_i32_0 = arith.constant 0 : i32
    %c0_i32_1 = arith.constant 0 : i32
    return %arg0, %c0_i32, %c0_i32_0 : i32, i32, i32
  }
}

</mosaic_0001>

<bundles_post_ra>
// kernel: tpu_custom_call.1
= control target key start
LH: loop header
LB: loop body
LE: loop exit
PB: predicated region body
PF: predicated region fallthrough
CT: control target
= control target key end

     0   :  { %s2124_s0 = inlined_call_operand.vmem [shape: f32[2,4,128], index: 0, kind: input, shape index: {}]   ;;  %s2125_s1 = inlined_call_operand.vmem [shape: f32[2,3,128], index: 1, kind: input, shape index: {}]   ;;  %s2126_s2 = inlined_call_operand.vmem [shape: f32[64,4], index: 2, kind: input, shape index: {}]   ;;  %s2127_s3 = inlined_call_operand.vmem [shape: f32[64,3], index: 3, kind: input, shape index: {}]   ;;  %s2128_s4 = inlined_call_operand.vmem [shape: f32[64,1], index: 4, kind: input, shape index: {}]   ;;  %s2129_s5 = inlined_call_operand.vmem [shape: f32[32,64], index: 5, kind: input, shape index: {}]   ;;  %s2130_s6 = inlined_call_operand.vmem [shape: f32[32,1], index: 6, kind: input, shape index: {}]   ;;  %s2131_s7 = inlined_call_operand.vmem [shape: f32[32,32], index: 7, kind: input, shape index: {}]   ;;  %s2132_s8 = inlined_call_operand.vmem [shape: f32[32,32], index: 8, kind: input, shape index: {}]   ;;  %s2133_s9 = inlined_call_operand.vmem [shape: f32[32,1], index: 9, kind: input, shape index: {}]   ;;  %s2134_s10 = inlined_call_operand.vmem [shape: f32[32,32], index: 10, kind: input, shape index: {}]   ;;  %s2135_s11 = inlined_call_operand.vmem [shape: f32[32,32], index: 11, kind: input, shape index: {}]   ;;  %s2136_s12 = inlined_call_operand.vmem [shape: f32[32,1], index: 12, kind: input, shape index: {}]   ;;  %s2137_s13 = inlined_call_operand.vmem [shape: f32[32,32], index: 13, kind: input, shape index: {}]   ;;  %s2138_s14 = inlined_call_operand.vmem [shape: f32[32,32], index: 14, kind: input, shape index: {}]   ;;  %s2139_s15 = inlined_call_operand.vmem [shape: f32[32,1], index: 15, kind: input, shape index: {}]   ;;  %s2140_s16 = inlined_call_operand.vmem [shape: f32[8,32], index: 16, kind: input, shape index: {}]   ;;  %s2141_s17 = inlined_call_operand.vmem [shape: f32[8,1], index: 17, kind: input, shape index: {}]   ;;  %s2142_s18 = inlined_call_operand.hbm [shape: f32[2,8,128], index: 18, kind: output, shape index: {}]  }
   0x1   :  { %2153 = sst [smem:[#allocation12_spill]] %s2124_s0 }
   0x2   :  { %2154 = sst [smem:[#allocation13_spill]] %s2125_s1 }
   0x3   :  { %2155 = sst [smem:[#allocation14_spill]] %s2126_s2 }
   0x4   :  { %2156 = sst [smem:[#allocation15_spill]] %s2127_s3 }
   0x5   :  { %2157 = sst [smem:[#allocation16_spill]] %s2141_s17 }
   0x6   :  { %2158 = sst [smem:[#allocation17_spill]] %s2142_s18 }
   0x7   :  { %23 = vsyncpa [#allocation3], 0 }
   0x8   :  { %25 = vsyncpa [#allocation3 + $0x1], 0  ;;  %s1750_s27 = smov 0   ;;  %s1752_s28 = smov 0  }
   0x9   :  { %s1754_s29 = smov 0   ;;  %s1756_s30 = smov 0  }
   0xa LB: > { %2159 = sst [smem:[#allocation5_spill]] %s1640_s27  ;;  %s1771_s0 = sadd.s32 4294967295, %s1652_s30   ;;  %s1652_s30 = sphi %s1756_s30, %s2178_s30   ;;  %s1648_s29 = sphi %s1754_s29, %s2180_s29   ;;  %s1644_s28 = sphi %s1752_s28, %s2182_s28   ;;  %s1640_s27 = sphi %s1750_s27, %s2181_s27  }
   0xb   : > { %2160 = sst [smem:[#allocation6_spill]] %s1648_s29  ;;  %s1489_s19 = sadd.s32 4294967294, %s1652_s30  }
   0xc   : > { %2161 = sst [smem:[#allocation7_spill]] %s1652_s30  ;;  %s1775_s1 = sadd.s32 1, %s1652_s30  }
   0xd   : > { %2162 = sst [smem:[#allocation8_spill]] %s1775_s1  ;;  %s426_s20 = sadd.s32 1, %s1648_s29 }
   0xe   : > { %s423_s21 = ssub.s32 %s1652_s30, %s1775_s1  ;;  %p436_p0 = scmp.ne.s32.totalorder %s1648_s29, %s1644_s28 }
   0xf   : > { %p424_p1 = scmp.eq.s32.totalorder %s423_s21, 0  ;;  %p437_p2 = scmp.eq.s32.totalorder %s1771_s0, 1 }
  0x10   : > { %p442_p3 = scmp.ne.s32.totalorder %s1644_s28, %s1640_s27  ;;  %p443_p4 = scmp.eq.s32.totalorder %s1489_s19, 1 }
  0x11   : > { %s1786_s22 = scalar_select %p424_p1, %s1648_s29, %s426_s20  }
  0x12   : > { %p1788_p5 = por %p437_p2, %p436_p0  ;;  %p1792_p6 = por %p443_p4, %p442_p3 }
  0x13   : > { %2163 = sst [smem:[#allocation9_spill]] %s1786_s22  ;;  %p1492_p7 = scmp.ge.s32.totalorder %s1652_s30, 1 }
  0x14   : > { %s2164_s2 = scalar_select %p1788_p5, 1, 0 }
  0x15   : > { %s2166_s23 = scalar_select %p1792_p6, 1, 0 }
  0x16   : > { %2165 = sst [smem:[#allocation10_spill]] %s2164_s2  ;;  %p523_p8 = scmp.lt.s32.totalorder %s1652_s30, 3 }
  0x17   : > { %2167 = sst [smem:[#allocation11_spill]] %s2166_s23 }
  0x18   : > { %p524_p9 = pnand %p1492_p7, %p523_p8 }
  0x19   : > { %p580_p10 = scmp.lt.s32.totalorder (!%p524_p9), %s1771_s0, 1  ;;  %s2168_s25 = sld [smem:[#allocation13_spill]] (!%p524_p9) }
  0x1a   : > { %527 = sbr.rel (%p524_p9) target bundleno = 1962 (0x7aa), region = 92  ;;  %s2169_s27 = sld [smem:[#allocation12_spill]] (!%p524_p9) }
  0x1b   : > { %s2170_s3 = sld [smem:[#allocation15_spill]] (!%p524_p9)  ;;  %s1544_s24 = sshll.u32 (!%p524_p9), %s1771_s0, 3 }
  0x1c   : > { %s2171_s17 = sld [smem:[#allocation14_spill]] (!%p524_p9) }
  0x1d   : > { %s2174_s19 = sld [smem:[#allocation17_spill]] (!%p524_p9) }
  0x1f   : > { %v751_v0 = vld [vmem:[%s2128_s4 + $0x28] sm:$0xff]  ;;  %v1654_v1 = vmov 0   ;;  %v753_v2 = vld [vmem:[%s2128_s4 + $0x38] sm:$0xff]  ;;  %s581_s20 = scalar_select %p580_p10, %s1771_s0, 1  ;;  %vm631_vm0 = vcmask 1042432   ;;  %vm701_vm1 = vcmask 1043456  }
  0x20   : > { %1588 = vset.pattern.permute.xlu1 %v1654_v1  ;;  %1587 = vset.pattern.permute.xlu0 %v1654_v1  ;;  %vm606_vm2 = vcmask 23552   ;;  %vm676_vm3 = vcmask 31744   ;;  %v750_v7 = vld [vmem:[%s2128_s4 + $0x20] sm:$0xff]  ;;  %v752_v8 = vld [vmem:[%s2128_s4 + $0x30] sm:$0xff]  ;;  %v747_v12 = vld [vmem:[%s2128_s4 + $0x8] sm:$0xff]  ;;  %vm838_vm4 = vcmask 523264  }
  0x21   : > { %781 = vperm.xlu1 %1588, %v751_v0   ;;  %791 = vperm.xlu0 %1587, %v753_v2   ;;  %s1494_s21 = sshll.u32 %s581_s20, 2  ;;  %v598_v3 = vld [vmem:[%s2170_s3] sm:$0xff]  ;;  %v599_v9 = vld [vmem:[%s2170_s3 + $0x8] sm:$0xff]  ;;  %v749_v13 = vld [vmem:[%s2128_s4 + $0x18] sm:$0xff]  ;;  %vm907_vm6 = vcmask 261120  }
  0x22   : > { %1589 = vset.pattern.permute.xlu2 %v1654_v1  ;;  %s587_s29 = scalar_lea.vmem %s2168_s25, %s1494_s21  ;;  %s583_s30 = scalar_lea.vmem %s2169_s27, %s1494_s21  ;;  %v590_v4 = vld [vmem:[%s2171_s17] sm:$0xff]  ;;  %v591_v10 = vld [vmem:[%s2171_s17 + $0x8] sm:$0xff]  ;;  %v600_v14 = vld [vmem:[%s2170_s3 + $0x10] sm:$0xff] }
  0x23   : > { %v589_v5 = vld [vmem:[%s587_s29] sm:$0x7]  ;;  %771 = vperm.xlu2 %1589, %v749_v13   ;;  %v592_v15 = vld [vmem:[%s2171_s17 + $0x10] sm:$0xff]  ;;  %v601_v17 = vld [vmem:[%s2170_s3 + $0x18] sm:$0xff]  ;;  %s2172_s29 = sld [smem:[#allocation16_spill]]  ;;  %s1413_s22 = scalar_lea.hbm %s2174_s19, %s1544_s24 }
  0x24   : > { %v588_v6 = vld [vmem:[%s583_s30] sm:$0xf]  ;;  %1496 = vmatpush.msk.msra.mxu0 %vm631_vm0, %v589_v5  ;;  %v748_v16 = vld [vmem:[%s2128_s4 + $0x10] sm:$0xff]  ;;  %v593_v18 = vld [vmem:[%s2171_s17 + $0x18] sm:$0xff]  ;;  %s577_s30 = sand.u32 1, %s1644_s28   ;;  %s1417_s27 = sshll.u32 %s1413_s22, 4  ;;  %s1418_s27 = int_to_ptr.hbm [resolvable:$true] %s1417_s27 }
  0x25   : > { %1505 = vmatpush.msk.msra.mxu1 %vm701_vm1, %v588_v6  ;;  %1497 = vmatmul.msk.f32.vlgmr.msra.gmra.mxu0 %vm606_vm2, %v598_v3  ;;  %v746_v11 = vld [vmem:[%s2128_s4] sm:$0xff]  ;;  %v816_v19 = vld [vmem:[%s2130_s6 + $0x10] sm:$0xff]  ;;  %v815_v20 = vld [vmem:[%s2130_s6 + $0x8] sm:$0xff]  ;;  %s1493_s21 = sshll.u32 %s577_s30, 3  ;;  %s1403_s18 = scalar_lea.sflag [#allocation3], %s577_s30 }
  0x26   : > { %1506 = vmatmul.msk.f32.vlgmr.msra.gmra.mxu1 %vm676_vm3, %v590_v4  ;;  %v817_v21 = vld [vmem:[%s2130_s6 + $0x18] sm:$0xff]  ;;  %v602_v22 = vld [vmem:[%s2170_s3 + $0x20] sm:$0xff]  ;;  %v603_v25 = vld [vmem:[%s2170_s3 + $0x28] sm:$0xff]  ;;  %s579_s20 = scalar_lea.vmem [#allocation2], %s1493_s21  ;;  %s1604_s2 = sshra.s32 %s1418_s27, 4  ;;  %s1605_s2 = int_to_ptr.hbm [resolvable:$true] %s1604_s2 }
  0x27   : > { %v594_v23 = vld [vmem:[%s2171_s17 + $0x20] sm:$0xff]  ;;  %v595_v26 = vld [vmem:[%s2171_s17 + $0x28] sm:$0xff]  ;;  %v604_v27 = vld [vmem:[%s2170_s3 + $0x30] sm:$0xff]  ;;  %s1415_s1 = sshll.u32 %s579_s20, 4  ;;  %s1610_s25 = scalar_lea.hbm %s2174_s19, 16  ;;  %s1416_s1 = int_to_ptr.vmem [resolvable:$true] %s1415_s1 }
  0x28   : > { %v814_v24 = vld [vmem:[%s2130_s6] sm:$0xff]  ;;  %v596_v28 = vld [vmem:[%s2171_s17 + $0x30] sm:$0xff]  ;;  %v605_v29 = vld [vmem:[%s2170_s3 + $0x38] sm:$0xff]  ;;  %p1611_p0 = scmp.lt.s32.totalorder %s1605_s2, %s2174_s19 }
  0x29   : > { %776 = vperm.xlu1 %1588, %v750_v7   ;;  %786 = vperm.xlu0 %1587, %v752_v8   ;;  %v597_v30 = vld [vmem:[%s2171_s17 + $0x38] sm:$0xff] }
  0x2b   : > { %766 = vperm.xlu2 %1589, %v748_v16   ;;  %v803_v16 = vld [vmem:[%s2129_s5 + $0x8] sm:$0xff] }
  0x2d   : > { %1498 = vmatmul.msk.f32.gmra.mxu0 %vm606_vm2, %v599_v9 }
  0x2e   : > { %1507 = vmatmul.msk.f32.gmra.mxu1 %vm676_vm3, %v591_v10 }
  0x31   : > { %756 = vperm.xlu1 %1588, %v746_v11   ;;  %761 = vperm.xlu0 %1587, %v747_v12  }
  0x33   : > { %835 = vperm.xlu2 %1589, %v817_v21  }
  0x35   : > { %1499 = vmatmul.msk.f32.gmra.mxu0 %vm606_vm2, %v600_v14 }
  0x36   : > { %1508 = vmatmul.msk.f32.gmra.mxu1 %vm676_vm3, %v592_v15  ;;  %v802_v15 = vld [vmem:[%s2129_s5] sm:$0xff] }
  0x39   : > { %830 = vperm.xlu0 %1587, %v816_v19   ;;  %825 = vperm.xlu1 %1588, %v815_v20   ;;  %v880_v20 = vlaneseq }
  0x3b   : > { %820 = vperm.xlu2 %1589, %v814_v24  }
  0x3d   : > { %1500 = vmatmul.msk.f32.gmra.mxu0 %vm606_vm2, %v601_v17  ;;  %v804_v17 = vld [vmem:[%s2129_s5 + $0x10] sm:$0xff] }
  0x3e   : > { %1509 = vmatmul.msk.f32.gmra.mxu1 %vm676_vm3, %v593_v18  ;;  %v805_v18 = vld [vmem:[%s2129_s5 + $0x18] sm:$0xff] }
  0x45   : > { %1501 = vmatmul.msk.f32.gmra.mxu0 %vm606_vm2, %v602_v22  ;;  %v1918_v22 = vand.u32 127, %v880_v20 }
  0x46   : > { %1510 = vmatmul.msk.f32.gmra.mxu1 %vm676_vm3, %v594_v23 }
  0x47   : > { %vm882_vm5 = vcmp.lt.s32.totalorder %v1918_v22, 16  ;;  %v1394_v22 = vld [vmem:[%s2172_s29] sm:$0xff]  ;;  %s1606_s29 = scalar_lea.hbm %s1605_s2, 8 }
  0x48   : > { %p1607_p11 = scmp.ne.s32.totalorder %s1605_s2, %s1606_s29  ;;  %p1612_p1 = scmp.lt.s32.totalorder %s1610_s25, %s1606_s29 }
  0x4a   : > { %p1608_p12 = pnand %p1607_p11, %p1788_p5  ;;  %p1613_p2 = por %p1612_p1, %p1611_p0 }
  0x4c   : > { %p1609_p13 = pneg %p1608_p12 }
  0x4d   : > { %1502 = vmatmul.msk.f32.gmra.mxu0 %vm606_vm2, %v603_v25 }
  0x4e   : > { %1511 = vmatmul.msk.f32.gmra.mxu1 %vm676_vm3, %v595_v26  ;;  %p1614_p3 = pnand %p1613_p2, %p1609_p13 }
  0x55   : > { %1503 = vmatmul.msk.f32.gmra.mxu0 %vm606_vm2, %v604_v27 }
  0x56   : > { %1512 = vmatmul.msk.f32.gmra.mxu1 %vm676_vm3, %v596_v28 }
  0x5d   : > { %1504 = vmatmul.msk.f32.gmra.mxu0 %vm606_vm2, %v605_v29 }
  0x5e   : > { %1513 = vmatmul.msk.f32.gmra.mxu1 %vm676_vm3, %v597_v30 }
  0x7d   : > { %v772_v48 = vpop.permute.xlu2 %771 }
  0x85   : > { %v767_v1 = vpop.permute.xlu2 %766 }
  0x8d   : > { %v836_v21 = vpop.permute.xlu2 %835 }
  0x93   : > { %v792_v44 = vpop.permute.xlu0 %791  ;;  %v782_v45 = vpop.permute.xlu1 %781 }
  0x95   : > { %v821_v27 = vpop.permute.xlu2 %820 }
  0x9b   : > { %v787_v49 = vpop.permute.xlu0 %786  ;;  %v777_v55 = vpop.permute.xlu1 %776 }
  0xa2   : > { %v652_v31 = vpop.f32.mrf.mxu0 }
  0xa3   : > { %v722_v32 = vpop.f32.mrf.mxu1  ;;  %v762_v5 = vpop.permute.xlu0 %761 }
  0xa4   : > { %v723_v33 = vadd.f32 %v722_v32, %v652_v31  ;;  %v757_v8 = vpop.permute.xlu1 %756 }
  0xa6   : > { %v794_v11 = vadd.f32 %v757_v8, %v723_v33 }
  0xa8   : > { %v806_v14 = vmax.f32 %v794_v11, 0.0 }
  0xaa   : > { %v655_v34 = vpop.f32.mrf.mxu0 }
  0xab   : > { %v725_v35 = vpop.f32.mrf.mxu1  ;;  %v831_v29 = vpop.permute.xlu0 %830 }
  0xac   : > { %v726_v2 = vadd.f32 %v725_v35, %v655_v34  ;;  %v826_v23 = vpop.permute.xlu1 %825 }
  0xae   : > { %v795_v9 = vadd.f32 %v762_v5, %v726_v2 }
  0xb0   : > { %v807_v13 = vmax.f32 %v795_v9, 0.0 }
  0xb2   : > { %v658_v36 = vpop.f32.mrf.mxu0 }
  0xb3   : > { %v728_v37 = vpop.f32.mrf.mxu1 }
  0xb4   : > { %v729_v62 = vadd.f32 %v728_v37, %v658_v36  ;;  %v1017_v37 = vld [vmem:[%s2133_s9 + $0x18] sm:$0xff] }
  0xb6   : > { %v796_v6 = vadd.f32 %v767_v1, %v729_v62 }
  0xb8   : > { %v808_v12 = vmax.f32 %v796_v6, 0.0 }
  0xba   : > { %v661_v38 = vpop.f32.mrf.mxu0 }
  0xbb   : > { %v731_v39 = vpop.f32.mrf.mxu1 }
  0xbc   : > { %v732_v59 = vadd.f32 %v731_v39, %v661_v38  ;;  %v1016_v38 = vld [vmem:[%s2133_s9 + $0x10] sm:$0xff]  ;;  %v1015_v39 = vld [vmem:[%s2133_s9 + $0x8] sm:$0xff] }
  0xbe   : > { %v797_v4 = vadd.f32 %v772_v48, %v732_v59  ;;  %v903_v48 = vld [vmem:[%s2132_s8] sm:$0xff]  ;;  %v952_v59 = vld [vmem:[%s2131_s7 + $0x18] sm:$0xff] }
  0xc0   : > { %v809_v10 = vmax.f32 %v797_v4, 0.0 }
  0xc2   : > { %v664_v40 = vpop.f32.mrf.mxu0 }
  0xc3   : > { %v734_v41 = vpop.f32.mrf.mxu1 }
  0xc4   : > { %v735_v56 = vadd.f32 %v734_v41, %v664_v40 }
  0xc6   : > { %v798_v0 = vadd.f32 %v777_v55, %v735_v56  ;;  %v906_v55 = vld [vmem:[%s2132_s8 + $0x18] sm:$0xff]  ;;  %v949_v56 = vld [vmem:[%s2131_s7] sm:$0xff] }
  0xc8   : > { %v810_v7 = vmax.f32 %v798_v0, 0.0 }
  0xca   : > { %v667_v42 = vpop.f32.mrf.mxu0 }
  0xcb   : > { %v737_v43 = vpop.f32.mrf.mxu1 }
  0xcc   : > { %v738_v53 = vadd.f32 %v737_v43, %v667_v42 }
  0xce   : > { %v799_v61 = vadd.f32 %v782_v45, %v738_v53  ;;  %v904_v53 = vld [vmem:[%s2132_s8 + $0x8] sm:$0xff] }
  0xd0   : > { %v811_v3 = vmax.f32 %v799_v61, 0.0 }
  0xd2   : > { %v670_v46 = vpop.f32.mrf.mxu0 }
  0xd3   : > { %v740_v47 = vpop.f32.mrf.mxu1 }
  0xd4   : > { %v741_v50 = vadd.f32 %v740_v47, %v670_v46 }
  0xd6   : > { %v800_v58 = vadd.f32 %v787_v49, %v741_v50 }
  0xd8   : > { %v812_v63 = vmax.f32 %v800_v58, 0.0  ;;  %v951_v58 = vld [vmem:[%s2131_s7 + $0x10] sm:$0xff] }
  0xda   : > { %v673_v51 = vpop.f32.mrf.mxu0 }
  0xdb   : > { %v743_v52 = vpop.f32.mrf.mxu1 }
  0xdc   : > { %v744_v54 = vadd.f32 %v743_v52, %v673_v51 }
  0xde   : > { %v801_v57 = vadd.f32 %v792_v44, %v744_v54  ;;  %v905_v54 = vld [vmem:[%s2132_s8 + $0x10] sm:$0xff] }
  0xe0   : > { %v813_v60 = vmax.f32 %v801_v57, 0.0  ;;  %v950_v57 = vld [vmem:[%s2131_s7 + $0x8] sm:$0xff] }
  0xe2   : > { %859 = vmatpush.msra.mxu2 %v813_v60 }
  0xe4   : > { %860 = vmatpush.msra.mxu2 %v812_v63  ;;  %v1014_v63 = vld [vmem:[%s2133_s9] sm:$0xff] }
  0xe6   : > { %861 = vmatpush.msra.mxu2 %v811_v3 }
  0xe8   : > { %862 = vmatpush.msra.mxu2 %v810_v7 }
  0xea   : > { %863 = vmatpush.msra.mxu2 %v809_v10 }
  0xec   : > { %864 = vmatpush.msra.mxu2 %v808_v12 }
  0xee   : > { %865 = vmatpush.msra.mxu2 %v807_v13 }
  0xf0   : > { %866 = vmatpush.msra.mxu2 %v806_v14 }
  0xf1   : > { %1514 = vmatmul.msk.f32.vlgmr.msra.gmra.mxu2 %vm838_vm4, %v802_v15 }
  0xf9   : > { %1515 = vmatmul.msk.f32.gmra.mxu2 %vm838_vm4, %v803_v16 }
 0x101   : > { %1516 = vmatmul.msk.f32.gmra.mxu2 %vm838_vm4, %v804_v17 }
 0x109   : > { %1517 = vmatmul.msk.f32.gmra.mxu2 %vm838_vm4, %v805_v18 }
 0x174   : > { %v868_v19 = vpop.f32.mrf.mxu2 }
 0x175   : > { %v869_v28 = vadd.f32 %v868_v19, %v821_v27 }
 0x177   : > { %v883_v33 = vsel %vm882_vm5, %v869_v28, -3.4028235e+38  ;;  %v895_v52 = vmax.f32 %v869_v28, 0.0 }
 0x17c   : > { %v871_v24 = vpop.f32.mrf.mxu2 }
 0x17d   : > { %v872_v25 = vadd.f32 %v871_v24, %v826_v23 }
 0x17f   : > { %v884_v26 = vsel %vm882_vm5, %v872_v25, -3.4028235e+38  ;;  %v896_v51 = vmax.f32 %v872_v25, 0.0 }
 0x180   : > { %889 = vmax.xlane.f32.xlu2 %v884_v26 }
 0x184   : > { %v874_v30 = vpop.f32.mrf.mxu2 }
 0x185   : > { %v875_v31 = vadd.f32 %v874_v30, %v831_v29  ;;  %v1175_v30 = vld [vmem:[%s2136_s12 + $0x18] sm:$0xff] }
 0x187   : > { %v885_v32 = vsel %vm882_vm5, %v875_v31, -3.4028235e+38  ;;  %v897_v50 = vmax.f32 %v875_v31, 0.0  ;;  %v1174_v31 = vld [vmem:[%s2136_s12 + $0x10] sm:$0xff] }
 0x188   : > { %891 = vmax.xlane.f32.xlu1 %v885_v32  ;;  %887 = vmax.xlane.f32.xlu2 %v883_v33  ;;  %v1172_v32 = vld [vmem:[%s2136_s12] sm:$0xff] }
 0x18c   : > { %v877_v34 = vpop.f32.mrf.mxu2 }
 0x18d   : > { %v878_v35 = vadd.f32 %v877_v34, %v836_v21 }
 0x18f   : > { %v886_v36 = vsel %vm882_vm5, %v878_v35, -3.4028235e+38  ;;  %v898_v49 = vmax.f32 %v878_v35, 0.0 }
 0x190   : > { %893 = vmax.xlane.f32.xlu0 %v886_v36 }
 0x1a0   : > { %1035 = vperm.xlu2 %1589, %v1017_v37  }
 0x1a1   : > { %1030 = vperm.xlu1 %1588, %v1016_v38  }
 0x1a8   : > { %1025 = vperm.xlu2 %1589, %v1015_v39  }
 0x1f3   : > { %v890_v40 = vpop.xlane.xlu2 %889 }
 0x1f4   : > { %v900_v46 = vmax.f32 %v890_v40, 0.0 }
 0x1fb   : > { %v892_v41 = vpop.xlane.xlu1 %891  ;;  %v888_v45 = vpop.xlane.xlu2 %887 }
 0x1fc   : > { %v901_v44 = vmax.f32 %v892_v41, 0.0  ;;  %v899_v47 = vmax.f32 %v888_v45, 0.0  ;;  %v1062_v41 = vld [vmem:[%s2135_s11] sm:$0xff]  ;;  %v1064_v45 = vld [vmem:[%s2135_s11 + $0x10] sm:$0xff] }
 0x203   : > { %v894_v42 = vpop.xlane.xlu0 %893  ;;  %v1036_v2 = vpop.permute.xlu2 %1035 }
 0x204   : > { %v902_v43 = vmax.f32 %v894_v42, 0.0  ;;  %v1107_v42 = vld [vmem:[%s2134_s10] sm:$0xff] }
 0x206   : > { %932 = vmatpush.msra.mxu3 %v902_v43  ;;  %v1063_v43 = vld [vmem:[%s2135_s11 + $0x8] sm:$0xff] }
 0x208   : > { %933 = vmatpush.msra.mxu3 %v901_v44  ;;  %v1108_v44 = vld [vmem:[%s2134_s10 + $0x8] sm:$0xff] }
 0x20a   : > { %934 = vmatpush.msra.mxu3 %v900_v46  ;;  %v1109_v46 = vld [vmem:[%s2134_s10 + $0x10] sm:$0xff] }
 0x20b   : > { %v1026_v7 = vpop.permute.xlu2 %1025 }
 0x20c   : > { %935 = vmatpush.msra.mxu3 %v899_v47  ;;  %v1065_v47 = vld [vmem:[%s2135_s11 + $0x18] sm:$0xff] }
 0x20d   : > { %1518 = vmatmul.msk.f32.vlgmr.msra.gmra.mxu3 %vm907_vm6, %v903_v48  ;;  %v1110_v48 = vld [vmem:[%s2134_s10 + $0x18] sm:$0xff] }
 0x20e   : > { %997 = vmatpush.msrb.mxu3 %v898_v49 }
 0x210   : > { %998 = vmatpush.msrb.mxu3 %v897_v50 }
 0x212   : > { %999 = vmatpush.msrb.mxu3 %v896_v51 }
 0x213   : > { %v1031_v4 = vpop.permute.xlu1 %1030 }
 0x214   : > { %1000 = vmatpush.msrb.mxu3 %v895_v52 }
 0x215   : > { %1519 = vmatmul.msk.f32.gmra.mxu3 %vm907_vm6, %v904_v53  ;;  %v1173_v53 = vld [vmem:[%s2136_s12 + $0x8] sm:$0xff] }
 0x21d   : > { %1520 = vmatmul.msk.f32.gmra.mxu3 %vm907_vm6, %v905_v54 }
 0x225   : > { %1521 = vmatmul.msk.f32.gmra.mxu3 %vm907_vm6, %v906_v55 }
 0x22d   : > { %1522 = vmatmul.msk.f32.vlgmr.msrb.gmra.mxu3 %vm907_vm6, %v949_v56 }
 0x235   : > { %1523 = vmatmul.msk.f32.gmra.mxu3 %vm907_vm6, %v950_v57 }
 0x23d   : > { %1524 = vmatmul.msk.f32.gmra.mxu3 %vm907_vm6, %v951_v58 }
 0x245   : > { %1525 = vmatmul.msk.f32.gmra.mxu3 %vm907_vm6, %v952_v59 }
 0x290   : > { %v937_v60 = vpop.f32.mrf.mxu3 }
 0x298   : > { %v940_v61 = vpop.f32.mrf.mxu3 }
 0x299   : > { %960 = vperm.xlu0 %1587, %v940_v61  }
 0x2a0   : > { %v943_v62 = vpop.f32.mrf.mxu3 }
 0x2a1   : > { %965 = vperm.xlu1 %1588, %v943_v62  }
 0x2a8   : > { %v946_v0 = vpop.f32.mrf.mxu3 }
 0x2a9   : > { %1020 = vperm.xlu1 %1588, %v1014_v63   ;;  %970 = vperm.xlu0 %1587, %v946_v0  }
 0x2b0   : > { %v1002_v1 = vpop.f32.mrf.mxu3 }
 0x2b1   : > { %955 = vperm.xlu0 %1587, %v937_v60  }
 0x2b8   : > { %v1005_v3 = vpop.f32.mrf.mxu3 }
 0x2c0   : > { %v1008_v9 = vpop.f32.mrf.mxu3 }
 0x2c8   : > { %v1011_v15 = vpop.f32.mrf.mxu3 }
 0x30b   : > { %v961_v5 = vpop.permute.xlu0 %960 }
 0x30c   : > { %v1006_v6 = vadd.f32 %v1005_v3, %v961_v5 }
 0x30e   : > { %v1039_v8 = vadd.f32 %v1026_v7, %v1006_v6 }
 0x310   : > { %v1043_v10 = vsel %vm882_vm5, %v1039_v8, -3.4028235e+38  ;;  %v1055_v25 = vmax.f32 %v1039_v8, 0.0 }
 0x311   : > { %1048 = vmax.xlane.f32.xlu1 %v1043_v10 }
 0x313   : > { %v966_v11 = vpop.permute.xlu1 %965 }
 0x314   : > { %v1009_v12 = vadd.f32 %v1008_v9, %v966_v11 }
 0x316   : > { %v1040_v13 = vadd.f32 %v1031_v4, %v1009_v12 }
 0x318   : > { %v1044_v14 = vsel %vm882_vm5, %v1040_v13, -3.4028235e+38  ;;  %v1056_v21 = vmax.f32 %v1040_v13, 0.0 }
 0x319   : > { %1050 = vmax.xlane.f32.xlu2 %v1044_v14 }
 0x31b   : > { %v971_v16 = vpop.permute.xlu0 %970  ;;  %v1021_v26 = vpop.permute.xlu1 %1020 }
 0x31c   : > { %v1012_v17 = vadd.f32 %v1011_v15, %v971_v16 }
 0x31e   : > { %v1041_v18 = vadd.f32 %v1036_v2, %v1012_v17 }
 0x320   : > { %v1045_v19 = vsel %vm882_vm5, %v1041_v18, -3.4028235e+38  ;;  %v1057_v20 = vmax.f32 %v1041_v18, 0.0  ;;  %v1332_v18 = vld [vmem:[%s2139_s15 + $0x10] sm:$0xff] }
 0x321   : > { %1052 = vmax.xlane.f32.xlu0 %v1045_v19  ;;  %v1333_v19 = vld [vmem:[%s2139_s15 + $0x18] sm:$0xff] }
 0x322   : > { %1155 = vmatpush.msrb.mxu0 %v1057_v20 }
 0x323   : > { %v956_v23 = vpop.permute.xlu0 %955 }
 0x324   : > { %v1003_v24 = vadd.f32 %v1002_v1, %v956_v23  ;;  %1156 = vmatpush.msrb.mxu0 %v1056_v21 }
 0x326   : > { %1157 = vmatpush.msrb.mxu0 %v1055_v25  ;;  %v1038_v27 = vadd.f32 %v1021_v26, %v1003_v24 }
 0x328   : > { %v1042_v28 = vsel %vm882_vm5, %v1038_v27, -3.4028235e+38  ;;  %v1054_v29 = vmax.f32 %v1038_v27, 0.0  ;;  %v1265_v27 = vld [vmem:[%s2137_s13] sm:$0xff] }
 0x329   : > { %1046 = vmax.xlane.f32.xlu0 %v1042_v28 }
 0x32a   : > { %1158 = vmatpush.msrb.mxu0 %v1054_v29 }
 0x32b   : > { %1530 = vmatmul.msk.f32.vlgmr.msrb.gmra.mxu0 %vm907_vm6, %v1107_v42  ;;  %v1330_v42 = vld [vmem:[%s2139_s15] sm:$0xff] }
 0x333   : > { %1531 = vmatmul.msk.f32.gmra.mxu0 %vm907_vm6, %v1108_v44 }
 0x33b   : > { %1532 = vmatmul.msk.f32.gmra.mxu0 %vm907_vm6, %v1109_v46 }
 0x33d   : > { %1193 = vperm.xlu0 %1587, %v1175_v30   ;;  %v1220_v30 = vld [vmem:[%s2138_s14] sm:$0xff] }
 0x343   : > { %1533 = vmatmul.msk.f32.gmra.mxu0 %vm907_vm6, %v1110_v48 }
 0x345   : > { %1188 = vperm.xlu0 %1587, %v1174_v31   ;;  %v1266_v31 = vld [vmem:[%s2137_s13 + $0x8] sm:$0xff] }
 0x34d   : > { %1178 = vperm.xlu0 %1587, %v1172_v32   ;;  %v1221_v32 = vld [vmem:[%s2138_s14 + $0x8] sm:$0xff] }
 0x384   : > { %v1049_v36 = vpop.xlane.xlu1 %1048 }
 0x385   : > { %v1059_v38 = vmax.f32 %v1049_v36, 0.0  ;;  %v1223_v36 = vld [vmem:[%s2138_s14 + $0x18] sm:$0xff] }
 0x38c   : > { %v1051_v33 = vpop.xlane.xlu2 %1050 }
 0x38d   : > { %v1060_v37 = vmax.f32 %v1051_v33, 0.0  ;;  %v1267_v33 = vld [vmem:[%s2137_s13 + $0x10] sm:$0xff] }
 0x394   : > { %v1053_v34 = vpop.xlane.xlu0 %1052 }
 0x395   : > { %v1061_v35 = vmax.f32 %v1053_v34, 0.0  ;;  %v1222_v34 = vld [vmem:[%s2138_s14 + $0x10] sm:$0xff] }
 0x397   : > { %1090 = vmatpush.msrb.mxu2 %v1061_v35  ;;  %v1268_v35 = vld [vmem:[%s2137_s13 + $0x18] sm:$0xff] }
 0x399   : > { %1091 = vmatpush.msrb.mxu2 %v1060_v37 }
 0x39b   : > { %1092 = vmatpush.msrb.mxu2 %v1059_v38 }
 0x39c   : > { %v1047_v39 = vpop.xlane.xlu0 %1046 }
 0x39d   : > { %v1058_v40 = vmax.f32 %v1047_v39, 0.0 }
 0x39f   : > { %1093 = vmatpush.msrb.mxu2 %v1058_v40  ;;  %v1331_v40 = vld [vmem:[%s2139_s15 + $0x8] sm:$0xff] }
 0x3a0   : > { %1526 = vmatmul.msk.f32.vlgmr.msrb.gmra.mxu2 %vm907_vm6, %v1062_v41 }
 0x3a8   : > { %1527 = vmatmul.msk.f32.gmra.mxu2 %vm907_vm6, %v1063_v43  ;;  %v1160_v54 = vpop.f32.mrf.mxu0 }
 0x3af   : > { %v1194_v61 = vpop.permute.xlu0 %1193 }
 0x3b0   : > { %1528 = vmatmul.msk.f32.gmra.mxu2 %vm907_vm6, %v1064_v45  ;;  %v1163_v55 = vpop.f32.mrf.mxu0 }
 0x3b7   : > { %v1189_v5 = vpop.permute.xlu0 %1188 }
 0x3b8   : > { %1529 = vmatmul.msk.f32.gmra.mxu2 %vm907_vm6, %v1065_v47  ;;  %v1166_v56 = vpop.f32.mrf.mxu0 }
 0x3bf   : > { %v1179_v14 = vpop.permute.xlu0 %1178 }
 0x3c0   : > { %v1169_v58 = vpop.f32.mrf.mxu0 }
 0x423   : > { %v1095_v49 = vpop.f32.mrf.mxu2 }
 0x42b   : > { %v1098_v50 = vpop.f32.mrf.mxu2 }
 0x42c   : > { %1118 = vperm.xlu2 %1589, %v1098_v50  }
 0x433   : > { %v1101_v51 = vpop.f32.mrf.mxu2 }
 0x434   : > { %1123 = vperm.xlu1 %1588, %v1101_v51  }
 0x43b   : > { %v1104_v52 = vpop.f32.mrf.mxu2 }
 0x43c   : > { %1113 = vperm.xlu1 %1588, %v1095_v49   ;;  %1128 = vperm.xlu2 %1589, %v1104_v52  }
 0x444   : > { %1183 = vperm.xlu2 %1589, %v1173_v53  }
 0x486   : > { %v1119_v57 = vpop.permute.xlu2 %1118 }
 0x487   : > { %v1164_v1 = vadd.f32 %v1163_v55, %v1119_v57 }
 0x496   : > { %v1129_v59 = vpop.permute.xlu2 %1128 }
 0x497   : > { %v1170_v60 = vadd.f32 %v1169_v58, %v1129_v59 }
 0x499   : > { %v1199_v62 = vadd.f32 %v1194_v61, %v1170_v60 }
 0x49b   : > { %v1203_v63 = vsel %vm882_vm5, %v1199_v62, -3.4028235e+38  ;;  %v1215_v0 = vmax.f32 %v1199_v62, 0.0 }
 0x49c   : > { %1210 = vmax.xlane.f32.xlu1 %v1203_v63 }
 0x49d   : > { %1313 = vmatpush.msra.mxu3 %v1215_v0 }
 0x49e   : > { %v1184_v2 = vpop.permute.xlu2 %1183 }
 0x49f   : > { %v1197_v3 = vadd.f32 %v1184_v2, %v1164_v1 }
 0x4a1   : > { %v1201_v4 = vsel %vm882_vm5, %v1197_v3, -3.4028235e+38  ;;  %v1213_v11 = vmax.f32 %v1197_v3, 0.0 }
 0x4a2   : > { %1206 = vmax.xlane.f32.xlu0 %v1201_v4 }
 0x4a6   : > { %v1124_v6 = vpop.permute.xlu1 %1123 }
 0x4a7   : > { %v1167_v7 = vadd.f32 %v1166_v56, %v1124_v6  ;;  %v1370_v6 = vld [vmem:[%s2140_s16] sm:$0xff] }
 0x4a9   : > { %v1198_v8 = vadd.f32 %v1189_v5, %v1167_v7 }
 0x4ab   : > { %v1202_v9 = vsel %vm882_vm5, %v1198_v8, -3.4028235e+38  ;;  %v1214_v10 = vmax.f32 %v1198_v8, 0.0 }
 0x4ac   : > { %1208 = vmax.xlane.f32.xlu2 %v1202_v9 }
 0x4ad   : > { %1314 = vmatpush.msra.mxu3 %v1214_v10 }
 0x4ae   : > { %v1114_v12 = vpop.permute.xlu1 %1113 }
 0x4af   : > { %v1161_v13 = vadd.f32 %v1160_v54, %v1114_v12  ;;  %1315 = vmatpush.msra.mxu3 %v1213_v11 }
 0x4b1   : > { %v1196_v15 = vadd.f32 %v1179_v14, %v1161_v13 }
 0x4b3   : > { %v1200_v16 = vsel %vm882_vm5, %v1196_v15, -3.4028235e+38  ;;  %v1212_v17 = vmax.f32 %v1196_v15, 0.0 }
 0x4b4   : > { %1204 = vmax.xlane.f32.xlu1 %v1200_v16 }
 0x4b5   : > { %1316 = vmatpush.msra.mxu3 %v1212_v17 }
 0x4b6   : > { %1538 = vmatmul.msk.f32.vlgmr.msra.gmra.mxu3 %vm907_vm6, %v1265_v27 }
 0x4be   : > { %1539 = vmatmul.msk.f32.gmra.mxu3 %vm907_vm6, %v1266_v31 }
 0x4c4   : > { %1346 = vperm.xlu2 %1589, %v1332_v18  }
 0x4c6   : > { %1540 = vmatmul.msk.f32.gmra.mxu3 %vm907_vm6, %v1267_v33 }
 0x4cd   : > { %1351 = vperm.xlu1 %1588, %v1333_v19  }
 0x4ce   : > { %1541 = vmatmul.msk.f32.gmra.mxu3 %vm907_vm6, %v1268_v35 }
 0x50f   : > { %v1211_v20 = vpop.xlane.xlu1 %1210 }
 0x510   : > { %v1219_v21 = vmax.f32 %v1211_v20, 0.0 }
 0x512   : > { %1248 = vmatpush.msrb.mxu1 %v1219_v21 }
 0x515   : > { %v1207_v23 = vpop.xlane.xlu0 %1206 }
 0x516   : > { %v1217_v26 = vmax.f32 %v1207_v23, 0.0 }
 0x51f   : > { %v1209_v24 = vpop.xlane.xlu2 %1208 }
 0x520   : > { %v1218_v25 = vmax.f32 %v1209_v24, 0.0 }
 0x522   : > { %1249 = vmatpush.msrb.mxu1 %v1218_v25 }
 0x524   : > { %1250 = vmatpush.msrb.mxu1 %v1217_v26 }
 0x527   : > { %v1205_v28 = vpop.xlane.xlu1 %1204  ;;  %v1347_v46 = vpop.permute.xlu2 %1346 }
 0x528   : > { %v1216_v29 = vmax.f32 %v1205_v28, 0.0 }
 0x52a   : > { %1251 = vmatpush.msrb.mxu1 %v1216_v29 }
 0x52b   : > { %1534 = vmatmul.msk.f32.vlgmr.msrb.gmra.mxu1 %vm907_vm6, %v1220_v30 }
 0x533   : > { %1535 = vmatmul.msk.f32.gmra.mxu1 %vm907_vm6, %v1221_v32 }
 0x539   : > { %v1318_v43 = vpop.f32.mrf.mxu3 }
 0x53b   : > { %1536 = vmatmul.msk.f32.gmra.mxu1 %vm907_vm6, %v1222_v34 }
 0x53f   : > { %v1352_v47 = vpop.permute.xlu1 %1351 }
 0x541   : > { %v1321_v44 = vpop.f32.mrf.mxu3 }
 0x543   : > { %1537 = vmatmul.msk.f32.gmra.mxu1 %vm907_vm6, %v1223_v36 }
 0x549   : > { %v1324_v45 = vpop.f32.mrf.mxu3 }
 0x551   : > { %v1327_v48 = vpop.f32.mrf.mxu3 }
 0x5a8   : > { %v1253_v37 = vpop.f32.mrf.mxu1 }
 0x5a9   : > { %1271 = vperm.xlu1 %1588, %v1253_v37  }
 0x5b0   : > { %v1256_v38 = vpop.f32.mrf.mxu1 }
 0x5b1   : > { %1276 = vperm.xlu0 %1587, %v1256_v38  }
 0x5b8   : > { %v1259_v39 = vpop.f32.mrf.mxu1 }
 0x5b9   : > { %1281 = vperm.xlu0 %1587, %v1259_v39  }
 0x5c0   : > { %v1262_v41 = vpop.f32.mrf.mxu1 }
 0x5c1   : > { %1341 = vperm.xlu0 %1587, %v1331_v40   ;;  %1286 = vperm.xlu2 %1589, %v1262_v41  }
 0x5c9   : > { %1336 = vperm.xlu2 %1589, %v1330_v42  }
 0x61b   : > { %v1287_v49 = vpop.permute.xlu2 %1286  ;;  %v1272_v52 = vpop.permute.xlu1 %1271 }
 0x61c   : > { %v1328_v50 = vadd.f32 %v1327_v48, %v1287_v49  ;;  %v1319_v54 = vadd.f32 %v1318_v43, %v1272_v52 }
 0x61e   : > { %v1357_v51 = vadd.f32 %v1352_v47, %v1328_v50 }
 0x620   : > { %v1361_v53 = vsel %vm882_vm5, %v1357_v51, -3.4028235e+38 }
 0x621   : > { %1368 = vmax.xlane.f32.xlu1 %v1361_v53 }
 0x623   : > { %v1277_v55 = vpop.permute.xlu0 %1276  ;;  %v1337_v56 = vpop.permute.xlu2 %1336 }
 0x624   : > { %v1354_v57 = vadd.f32 %v1337_v56, %v1319_v54  ;;  %v1322_v63 = vadd.f32 %v1321_v44, %v1277_v55 }
 0x626   : > { %v1358_v58 = vsel %vm882_vm5, %v1354_v57, -3.4028235e+38 }
 0x629   : > { %1362 = vmax.xlane.f32.xlu1 %v1358_v58 }
 0x62b   : > { %v1282_v59 = vpop.permute.xlu0 %1281 }
 0x62c   : > { %v1325_v60 = vadd.f32 %v1324_v45, %v1282_v59 }
 0x62e   : > { %v1356_v61 = vadd.f32 %v1347_v46, %v1325_v60 }
 0x630   : > { %v1360_v62 = vsel %vm882_vm5, %v1356_v61, -3.4028235e+38 }
 0x631   : > { %1366 = vmax.xlane.f32.xlu0 %v1360_v62 }
 0x633   : > { %v1342_v0 = vpop.permute.xlu0 %1341 }
 0x634   : > { %v1355_v1 = vadd.f32 %v1342_v0, %v1322_v63 }
 0x636   : > { %v1359_v2 = vsel %vm882_vm5, %v1355_v1, -3.4028235e+38 }
 0x637   : > { %1364 = vmax.xlane.f32.xlu2 %v1359_v2 }
 0x694   : > { %v1369_v3 = vpop.xlane.xlu1 %1368 }
 0x695   : > { %1386 = vmatpush.msra.mxu2 %v1369_v3 }
 0x69c   : > { %v1363_v7 = vpop.xlane.xlu1 %1362 }
 0x6a4   : > { %v1367_v4 = vpop.xlane.xlu0 %1366 }
 0x6a5   : > { %1387 = vmatpush.msra.mxu2 %v1367_v4 }
 0x6aa   : > { %v1365_v5 = vpop.xlane.xlu2 %1364 }
 0x6ab   : > { %1388 = vmatpush.msra.mxu2 %v1365_v5 }
 0x6ad   : > { %1389 = vmatpush.msra.mxu2 %v1363_v7 }
 0x6ae   : > { %1542 = vmatmul.msk.f32.vlgmr.msra.gmra.mxu2 %vm907_vm6, %v1370_v6 }
 0x731   : > { %v1391_v8 = vpop.f32.mrf.mxu2 }
 0x732   : > { %v1395_v9 = vadd.f32 %v1394_v22, %v1391_v8 }
 0x734   : > { %1398 = vperm.xlu0 %1587, %v1395_v9  }
 0x7a6   : > { %v1399_v10 = vpop.permute.xlu0 %1398 }
 0x7a7   : > { %1401 = vst [vmem:[%s579_s20] sm:$0xff] %v1399_v10 }
 0x7a8   : > { %1617 = shalt.err (!%p1614_p3)
}
 0x7a9   : > { %1547 = dma.vmem_to_hbm [thread:$0]  (%p1788_p5), %s1416_s1, 128, %s1418_s27, %s1403_s18  }
 0x7aa PF: > { %s2175_s30 = sld [smem:[#allocation7_spill]] }
 0x7ab   : > { %s2176_s26 = sld [smem:[#allocation5_spill]] }
 0x7b0   : > { %p1553_p4 = scmp.ge.s32.totalorder %s2175_s30, 2 }
 0x7b1   : > { %s1429_s20 = sand.u32 1, %s2176_s26  }
 0x7b2   : > { %p1550_p7 = pnand %p1553_p4, %p1792_p6  ;;  %s1430_s3 = scalar_lea.sflag [#allocation3], %s1429_s20 }
 0x7b4   : > { %p1551_p8 = pneg %p1550_p7 }
 0x7b6   : > { %1635 = dma.done.wait (%p1551_p8), %s1430_s3, 128  }
 0x7b7   : > { %1637 = vsyncadd (%p1551_p8), %s1430_s3, 4294967168  ;;  %s2178_s30 = sld [smem:[#allocation8_spill]]  ;;  %s2181_s27 = smov %s1644_s28 }
 0x7b8   : > { %s2179_s2 = sld [smem:[#allocation6_spill]] }
 0x7b9   : > { %s2180_s29 = sld [smem:[#allocation9_spill]] }
 0x7bd   : > { %p28_p9 = scmp.ge.s32.totalorder %s2178_s30, 4  }
 0x7be   : > { %s2182_s28 = smov %s2179_s2 }
 0x7bf   :  { %30 = sbr.rel (!%p28_p9) target bundleno = 10 (0xa), region = 130 }
 0x7c4   :  { %1436 = vsyncpa [#allocation3], 1 }
 0x7c5   :  { %1438 = vsyncpa [#allocation3 + $0x1], 1 }

</bundles_post_ra>
